<compile_context>
chip_gen: v7x
topology: tpu7x:2x2x1
jax: 0.10.0
libtpu: 0.0.40
codegen_flags: <defaults>
</compile_context>

<pallas_src>
import functools

import numpy as np
import jax
import jax.numpy as jnp
from jax.experimental import pallas as pl
from jax.experimental.pallas import tpu as pltpu

# Per-input Kronecker weight above this size -> use the separable path instead.
_KRON_WEIGHT_LIMIT = 2 * 1024 * 1024
# Full-sample flat output block above this size -> use the (H-tiled) separable path.
_FLAT_OUT_LIMIT = 4 * 1024 * 1024
# Per-step output block budget used to pick the H tile in the separable path.
_SEP_OUT_BLOCK_BUDGET = 4 * 1024 * 1024


# ----------------------------- host-side weights ------------------------------

@functools.lru_cache(maxsize=None)
def _interp_matrix_np(out_size: int, in_size: int) -> np.ndarray:
    """1-D bilinear interpolation weights, PyTorch align_corners=False."""
    A = np.zeros((out_size, in_size), dtype=np.float32)
    scale = in_size / out_size
    for o in range(out_size):
        s = max(scale * (o + 0.5) - 0.5, 0.0)
        i0 = min(int(np.floor(s)), in_size - 1)
        i1 = min(i0 + 1, in_size - 1)
        w1 = s - i0
        A[o, i0] += 1.0 - w1
        A[o, i1] += w1
    return A


@functools.lru_cache(maxsize=None)
def _kron_matrix_np(Ho: int, Hi: int, Wo: int, Wi: int) -> np.ndarray:
    """Fused 2-D bilinear weight, K[hi*Wi+wi, ho*Wo+wo] = Ah[ho,hi]*Aw[wo,wi]."""
    Ah = _interp_matrix_np(Ho, Hi)          # (Ho, Hi)
    Aw = _interp_matrix_np(Wo, Wi)          # (Wo, Wi)
    K = np.einsum("ab,cd->bdac", Ah, Aw).reshape(Hi * Wi, Ho * Wo)
    return np.ascontiguousarray(K)


def _resident_spec(shape, index_map):
    """Constant-index (resident) weight block; single-buffered to save VMEM."""
    try:
        return pl.BlockSpec(shape, index_map, pipeline_mode=pl.Buffered(1))
    except (AttributeError, TypeError):      # older jax without pipeline_mode
        return pl.BlockSpec(shape, index_map)


@functools.lru_cache(maxsize=1)
def _pick_vmem_limit() -> int:
    """Scoped-VMEM limit per generation: 64 MiB on 128-MiB chips, 40 MiB on v7x."""
    cap = 64 * 1024 * 1024
    try:
        cap = int(getattr(pltpu.get_tpu_info(), "vmem_capacity_bytes", cap))
    except Exception:
        pass
    return 64 * 1024 * 1024 if cap >= 96 * 1024 * 1024 else 40 * 1024 * 1024


# ------------------------- path 1: flat / Kronecker ---------------------------

def _concat_flat(xs, N, Ho, Wo, Ctot, out_dtype, vmem_limit):
    HWo = Ho * Wo
    itemsize = jnp.dtype(out_dtype).itemsize

    operands, in_specs, metas = [], [], []
    flops = 0
    bytes_accessed = N * Ctot * HWo * itemsize           # output write
    coff = 0
    for x in xs:
        _, C, Hi, Wi = (int(d) for d in x.shape)
        identity = (Hi, Wi) == (Ho, Wo)
        operands.append(x.reshape(N, C, Hi * Wi))        # free wrapper reshape
        in_specs.append(pl.BlockSpec((1, C, Hi * Wi), lambda n: (n, 0, 0)))
        bytes_accessed += N * C * Hi * Wi * x.dtype.itemsize
        if not identity:
            w_dtype = x.dtype if jnp.issubdtype(x.dtype, jnp.floating) else jnp.float32
            K = jnp.asarray(_kron_matrix_np(Ho, Hi, Wo, Wi), dtype=w_dtype)
            operands.append(K)                           # (Hi*Wi, Ho*Wo), resident
            in_specs.append(pl.BlockSpec((Hi * Wi, HWo), lambda n: (0, 0)))
            bytes_accessed += K.size * K.dtype.itemsize
            flops += 2 * N * C * Hi * Wi * HWo
        metas.append((C, coff, identity))
        coff += C

    def kernel(*refs):
        out_ref = refs[-1]                               # (1, Ctot, Ho*Wo)
        r = 0
        for C, off, identity in metas:
            x_ref = refs[r]; r += 1
            if identity:
                # Already at target size: one full-width (lane-dense) copy.
                out_ref[0, off:off + C] = x_ref[0].astype(out_ref.dtype)
            else:
                k_ref = refs[r]; r += 1
                # One MXU matmul per input; result & store are Ho*Wo lane-dense.
                out_ref[0, off:off + C] = jnp.dot(
                    x_ref[0], k_ref[...],
                    preferred_element_type=jnp.float32).astype(out_ref.dtype)

    out_flat = pl.pallas_call(
        kernel,
        out_shape=jax.ShapeDtypeStruct((N, Ctot, HWo), out_dtype),
        grid=(N,),
        in_specs=in_specs,
        out_specs=pl.BlockSpec((1, Ctot, HWo), lambda n: (n, 0, 0)),
        compiler_params=pltpu.CompilerParams(
            dimension_semantics=("parallel",),           # megacore over batch
            vmem_limit_bytes=vmem_limit),
        cost_estimate=pl.CostEstimate(
            flops=flops, transcendentals=0, bytes_accessed=bytes_accessed),
    )(*operands)
    return out_flat.reshape(N, Ctot, Ho, Wo)             # free, contiguous


# ------------------- path 2: separable, H-tiled (large maps) ------------------

def _choose_h_tile(Ho, Wo, Ctot, itemsize):
    """Largest H tile (divisor of Ho, multiple of 8) whose output block fits."""
    if Ctot * Ho * Wo * itemsize <= _SEP_OUT_BLOCK_BUDGET:
        return Ho
    best = Ho
    for t in range(8, Ho, 8):
        if Ho % t == 0 and Ctot * t * Wo * itemsize <= _SEP_OUT_BLOCK_BUDGET:
            best = t
    if best == Ho:                                       # nothing under budget
        for t in range(8, Ho, 8):
            if Ho % t == 0:
                return t                                 # smallest aligned tile
    return best


def _concat_separable(xs, N, Ho, Wo, Ctot, out_dtype, vmem_limit):
    itemsize = jnp.dtype(out_dtype).itemsize
    tHo = _choose_h_tile(Ho, Wo, Ctot, itemsize)
    nH = Ho // tHo

    operands, in_specs, metas = [], [], []
    flops = 0
    bytes_accessed = N * Ctot * Ho * Wo * itemsize
    coff = 0
    for x in xs:
        _, C, Hi, Wi = (int(d) for d in x.shape)
        needs_h = Hi != Ho
        needs_w = Wi != Wo
        w_dtype = x.dtype if jnp.issubdtype(x.dtype, jnp.floating) else jnp.float32

        operands.append(x)
        if needs_h:
            # Ah gathers arbitrary source rows: keep the full input resident
            # across the H-tile axis (constant index -> DMA de-duplicated).
            in_specs.append(pl.BlockSpec((1, C, Hi, Wi), lambda n, h: (n, 0, 0, 0)))
        else:
            # Rows line up with output rows: stream only the current H tile.
            in_specs.append(pl.BlockSpec((1, C, tHo, Wi), lambda n, h: (n, 0, h, 0)))
        bytes_accessed += N * C * Hi * Wi * x.dtype.itemsize

        if needs_h:
            Ah = jnp.asarray(_interp_matrix_np(Ho, Hi), dtype=w_dtype)      # (Ho, Hi)
            operands.append(Ah)
            in_specs.append(pl.BlockSpec((tHo, Hi), lambda n, h: (h, 0)))
            bytes_accessed += Ah.size * Ah.dtype.itemsize
            flops += 2 * N * C * Ho * Hi * Wi
        if needs_w:
            AwT = jnp.asarray(_interp_matrix_np(Wo, Wi).T, dtype=w_dtype)   # (Wi, Wo)
            operands.append(AwT)
            in_specs.append(_resident_spec((Wi, Wo), lambda n, h: (0, 0)))
            bytes_accessed += AwT.size * AwT.dtype.itemsize
            flops += 2 * N * C * Ho * Wi * Wo
        metas.append((C, Hi, Wi, coff, needs_h, needs_w))
        coff += C

    def kernel(*refs):
        out_ref = refs[-1]                               # (1, Ctot, tHo, Wo)
        r = 0
        for C, Hi, Wi, off, needs_h, needs_w in metas:
            x_ref = refs[r]; r += 1
            ah = awt = None
            if needs_h:
                ah = refs[r][...]; r += 1                # (tHo, Hi)
            if needs_w:
                awt = refs[r][...]; r += 1               # (Wi, Wo)
            x = x_ref[0]

            if needs_h:
                # Batched H-interp: ONE wide MXU op for all channels,
                # (tHo, Hi) @ (Hi, C*Wi); transposes go to the idle XLU slot.
                xt = jnp.transpose(x, (1, 0, 2)).reshape(Hi, C * Wi)
                u = jnp.dot(ah, xt, preferred_element_type=jnp.float32)
                u = u.astype(x.dtype)                    # keep bf16 on the MXU
                if needs_w:
                    v = jnp.dot(u.reshape(tHo * C, Wi), awt,
                                preferred_element_type=jnp.float32)
                    v = v.reshape(tHo, C, Wo)
                else:
                    v = u.reshape(tHo, C, Wi)            # Wi == Wo already
                y = jnp.transpose(v, (1, 0, 2))          # (C, tHo, Wo)
            elif needs_w:
                # W-interp for all channels at once: (C*tHo, Wi) @ (Wi, Wo).
                y = jnp.dot(x.reshape(C * tHo, Wi), awt,
                            preferred_element_type=jnp.float32).reshape(C, tHo, Wo)
            else:
                y = x                                    # already at target size
            # Single wide store of the whole (C, tHo, Wo) channel slice.
            out_ref[0, off:off + C] = y.astype(out_ref.dtype)

    return pl.pallas_call(
        kernel,
        out_shape=jax.ShapeDtypeStruct((N, Ctot, Ho, Wo), out_dtype),
        grid=(N, nH),
        in_specs=in_specs,
        out_specs=pl.BlockSpec((1, Ctot, tHo, Wo), lambda n, h: (n, 0, h, 0)),
        compiler_params=pltpu.CompilerParams(
            dimension_semantics=("parallel", "parallel"),
            vmem_limit_bytes=vmem_limit),
        cost_estimate=pl.CostEstimate(
            flops=flops, transcendentals=0, bytes_accessed=bytes_accessed),
    )(*operands)


# --------------------------------- wrapper ------------------------------------

def custom_concat(xs, dimension: int = 1):
    """Pallas implementation of CustomConcat.forward (channel concat, d=1)."""
    if dimension != 1:
        # TODO(synk): only the module's default d=1 (channel concat) is implemented.
        raise NotImplementedError("custom_concat: only dimension=1 is supported")

    xs = list(xs)
    N = int(xs[0].shape[0])
    Ho = max(int(x.shape[2]) for x in xs)
    Wo = max(int(x.shape[3]) for x in xs)
    Ctot = sum(int(x.shape[1]) for x in xs)
    out_dtype = jnp.result_type(*[x.dtype for x in xs])
    itemsize = jnp.dtype(out_dtype).itemsize
    vmem_limit = _pick_vmem_limit()

    # Flat/Kronecker path only while every fused weight and the per-sample
    # output slab stay small; otherwise the H-tiled separable path.
    flat_ok = Ctot * Ho * Wo * itemsize <= _FLAT_OUT_LIMIT
    for x in xs:
        _, C, Hi, Wi = (int(d) for d in x.shape)
        if (Hi, Wi) != (Ho, Wo) and Hi * Wi * Ho * Wo * itemsize > _KRON_WEIGHT_LIMIT:
            flat_ok = False
    if flat_ok:
        return _concat_flat(xs, N, Ho, Wo, Ctot, out_dtype, vmem_limit)
    # TODO(synk): for very large Hi/Wi a 2-tap VPU lerp would beat the dense
    # interp matmul (only 2 nonzeros/row); the separable MXU form is kept here.
    return _concat_separable(xs, N, Ho, Wo, Ctot, out_dtype, vmem_limit)


# ------------------------- pure-JAX reference check ---------------------------

def _ref_bilinear_resize(x, Ho, Wo):
    """Gather-based bilinear resize (PyTorch align_corners=False)."""
    N, C, Hi, Wi = (int(d) for d in x.shape)
    if (Hi, Wi) == (Ho, Wo):
        return x

    def axis(out_size, in_size):
        o = jnp.arange(out_size, dtype=jnp.float32)
        s = jnp.maximum((o + 0.5) * (in_size / out_size) - 0.5, 0.0)
        i0 = jnp.clip(jnp.floor(s).astype(jnp.int32), 0, in_size - 1)
        i1 = jnp.minimum(i0 + 1, in_size - 1)
        w1 = s - i0.astype(jnp.float32)
        return i0, i1, 1.0 - w1, w1

    y0, y1, wy0, wy1 = axis(Ho, Hi)
    x0, x1, wx0, wx1 = axis(Wo, Wi)
    r0, r1 = x[:, :, y0, :], x[:, :, y1, :]
    v00, v01 = r0[:, :, :, x0], r0[:, :, :, x1]
    v10, v11 = r1[:, :, :, x0], r1[:, :, :, x1]
    wy0 = wy0[None, None, :, None]; wy1 = wy1[None, None, :, None]
    wx0 = wx0[None, None, None, :]; wx1 = wx1[None, None, None, :]
    return wy0 * (wx0 * v00 + wx1 * v01) + wy1 * (wx0 * v10 + wx1 * v11)


def custom_concat_reference(xs):
    Ho = max(int(x.shape[2]) for x in xs)
    Wo = max(int(x.shape[3]) for x in xs)
    return jnp.concatenate([_ref_bilinear_resize(x, Ho, Wo) for x in xs], axis=1)


# ----------------------------------- main -------------------------------------

if __name__ == "__main__":
    key = jax.random.PRNGKey(0)
    k1, k2, k3, k4, k5 = jax.random.split(key, 5)

    # f32: identity + (H,W) upsample + H-only upsample.
    x1 = jax.random.normal(k1, (2, 4, 16, 16), jnp.float32)
    x2 = jax.random.normal(k2, (2, 3, 8, 8), jnp.float32)
    x3 = jax.random.normal(k3, (2, 5, 8, 16), jnp.float32)
    xs = [x1, x2, x3]
    out = jax.block_until_ready(custom_concat(xs))
    ref = jax.block_until_ready(custom_concat_reference(xs))
    assert out.shape == (2, 12, 16, 16), out.shape
    assert jnp.allclose(out, ref, atol=1e-4, rtol=1e-4), (
        "f32 mismatch, max abs err = "
        + str(float(jnp.max(jnp.abs(out - ref)))))

    # bf16: identity + W-only upsample, bf16 weights on the MXU w/ f32 accumulation.
    y1 = jax.random.normal(k4, (2, 2, 8, 16), jnp.bfloat16)
    y2 = jax.random.normal(k5, (2, 3, 8, 8), jnp.bfloat16)
    ys = [y1, y2]
    out_b = jax.block_until_ready(custom_concat(ys))
    ref_b = custom_concat_reference([y.astype(jnp.float32) for y in ys])
    assert out_b.shape == (2, 5, 8, 16), out_b.shape
    assert out_b.dtype == jnp.bfloat16, out_b.dtype
    err_b = float(jnp.max(jnp.abs(out_b.astype(jnp.float32) - ref_b)))
    assert err_b < 6e-2, "bf16 mismatch, max abs err = " + str(err_b)

    print("KERNEL_OK")
</pallas_src>

<mosaic_0001>
module attributes {stable_mosaic.version = 11 : i64} {
  func.func @kernel(%arg0: i32, %arg1: memref<1x4x256xf32, #tpu.memory_space<vmem>>, %arg2: memref<1x3x64xf32, #tpu.memory_space<vmem>>, %arg3: memref<64x256xf32, #tpu.memory_space<vmem>>, %arg4: memref<1x5x128xf32, #tpu.memory_space<vmem>>, %arg5: memref<128x256xf32, #tpu.memory_space<vmem>>, %arg6: memref<1x12x256xf32, #tpu.memory_space<vmem>>) attributes {dimension_semantics = [#tpu.dimension_semantics<parallel>], iteration_bounds = array<i64: 2>, scalar_prefetch = 0 : i64, scratch_operands = 0 : i64, tpu.core_type = #tpu.core_type<tc>, window_params = [{transform_indices = @transform_0, window_bounds = array<i64: 1, 4, 256>}, {transform_indices = @transform_1, window_bounds = array<i64: 1, 3, 64>}, {pipeline_mode = #tpu.pipeline_mode<synchronous>, transform_indices = @transform_2, window_bounds = array<i64: 64, 256>}, {transform_indices = @transform_3, window_bounds = array<i64: 1, 5, 128>}, {pipeline_mode = #tpu.pipeline_mode<synchronous>, transform_indices = @transform_4, window_bounds = array<i64: 128, 256>}, {transform_indices = @transform_5, window_bounds = array<i64: 1, 12, 256>}]} {
    %c0 = arith.constant 0 : index
    %c0_0 = arith.constant 0 : index
    %c0_1 = arith.constant 0 : index
    %0 = vector.load %arg1[%c0, %c0_0, %c0_1] : memref<1x4x256xf32, #tpu.memory_space<vmem>>, vector<1x4x256xf32>
    %1 = vector.shape_cast %0 : vector<1x4x256xf32> to vector<4x256xf32>
    %c0_2 = arith.constant 0 : index
    %c0_3 = arith.constant 0 : index
    %c0_4 = arith.constant 0 : index
    %2 = vector.load %arg6[%c0_2, %c0_3, %c0_4] : memref<1x12x256xf32, #tpu.memory_space<vmem>>, vector<1x4x256xf32>
    %3 = vector.shape_cast %2 : vector<1x4x256xf32> to vector<4x256xf32>
    %4 = vector.shape_cast %1 : vector<4x256xf32> to vector<1x4x256xf32>
    tpu.vector_store %arg6[%c0_2, %c0_3, %c0_4], %4 {strides = array<i32>} : memref<1x12x256xf32, #tpu.memory_space<vmem>>, vector<1x4x256xf32>,
    %c0_5 = arith.constant 0 : index
    %c0_6 = arith.constant 0 : index
    %c0_7 = arith.constant 0 : index
    %5 = vector.load %arg2[%c0_5, %c0_6, %c0_7] : memref<1x3x64xf32, #tpu.memory_space<vmem>>, vector<1x3x64xf32>
    %6 = vector.shape_cast %5 : vector<1x3x64xf32> to vector<3x64xf32>
    %c0_8 = arith.constant 0 : index
    %c0_9 = arith.constant 0 : index
    %7 = vector.load %arg3[%c0_8, %c0_9] : memref<64x256xf32, #tpu.memory_space<vmem>>, vector<64x256xf32>
    %cst = arith.constant dense<0.000000e+00> : vector<3x256xf32>
    %8 = tpu.matmul %6, %7, %cst {dimension_numbers = #tpu.dot_dimension_numbers<[1], [0], [0], [1], [0, 0, 1, 1], [], []>} : vector<3x64xf32>, vector<64x256xf32>, vector<3x256xf32> -> vector<3x256xf32>
    %c0_10 = arith.constant 0 : index
    %c4 = arith.constant 4 : index
    %c0_11 = arith.constant 0 : index
    %9 = vector.load %arg6[%c0_10, %c4, %c0_11] : memref<1x12x256xf32, #tpu.memory_space<vmem>>, vector<1x3x256xf32>
    %10 = vector.shape_cast %9 : vector<1x3x256xf32> to vector<3x256xf32>
    %11 = vector.shape_cast %8 : vector<3x256xf32> to vector<1x3x256xf32>
    tpu.vector_store %arg6[%c0_10, %c4, %c0_11], %11 {strides = array<i32>} : memref<1x12x256xf32, #tpu.memory_space<vmem>>, vector<1x3x256xf32>,
    %c0_12 = arith.constant 0 : index
    %c0_13 = arith.constant 0 : index
    %c0_14 = arith.constant 0 : index
    %12 = vector.load %arg4[%c0_12, %c0_13, %c0_14] : memref<1x5x128xf32, #tpu.memory_space<vmem>>, vector<1x5x128xf32>
    %13 = vector.shape_cast %12 : vector<1x5x128xf32> to vector<5x128xf32>
    %c0_15 = arith.constant 0 : index
    %c0_16 = arith.constant 0 : index
    %14 = vector.load %arg5[%c0_15, %c0_16] : memref<128x256xf32, #tpu.memory_space<vmem>>, vector<128x256xf32>
    %cst_17 = arith.constant dense<0.000000e+00> : vector<5x256xf32>
    %15 = tpu.matmul %13, %14, %cst_17 {dimension_numbers = #tpu.dot_dimension_numbers<[1], [0], [0], [1], [0, 0, 1, 1], [], []>} : vector<5x128xf32>, vector<128x256xf32>, vector<5x256xf32> -> vector<5x256xf32>
    %c0_18 = arith.constant 0 : index
    %c7 = arith.constant 7 : index
    %c0_19 = arith.constant 0 : index
    %16 = vector.load %arg6[%c0_18, %c7, %c0_19] : memref<1x12x256xf32, #tpu.memory_space<vmem>>, vector<1x5x256xf32>
    %17 = vector.shape_cast %16 : vector<1x5x256xf32> to vector<5x256xf32>
    %18 = vector.shape_cast %15 : vector<5x256xf32> to vector<1x5x256xf32>
    tpu.vector_store %arg6[%c0_18, %c7, %c0_19], %18 {strides = array<i32>} : memref<1x12x256xf32, #tpu.memory_space<vmem>>, vector<1x5x256xf32>,
    return
  }
  func.func @transform_0(%arg0: i32) -> (i32, i32, i32) {
    %c0_i32 = arith.constant 0 : i32
    %c0_i32_0 = arith.constant 0 : i32
    %c0_i32_1 = arith.constant 0 : i32
    return %arg0, %c0_i32, %c0_i32_0 : i32, i32, i32
  }
  func.func @transform_1(%arg0: i32) -> (i32, i32, i32) {
    %c0_i32 = arith.constant 0 : i32
    %c0_i32_0 = arith.constant 0 : i32
    %c0_i32_1 = arith.constant 0 : i32
    return %arg0, %c0_i32, %c0_i32_0 : i32, i32, i32
  }
  func.func @transform_2(%arg0: i32) -> (i32, i32) {
    %c0_i32 = arith.constant 0 : i32
    %c0_i32_0 = arith.constant 0 : i32
    %c0_i32_1 = arith.constant 0 : i32
    return %c0_i32, %c0_i32_0 : i32, i32
  }
  func.func @transform_3(%arg0: i32) -> (i32, i32, i32) {
    %c0_i32 = arith.constant 0 : i32
    %c0_i32_0 = arith.constant 0 : i32
    %c0_i32_1 = arith.constant 0 : i32
    return %arg0, %c0_i32, %c0_i32_0 : i32, i32, i32
  }
  func.func @transform_4(%arg0: i32) -> (i32, i32) {
    %c0_i32 = arith.constant 0 : i32
    %c0_i32_0 = arith.constant 0 : i32
    %c0_i32_1 = arith.constant 0 : i32
    return %c0_i32, %c0_i32_0 : i32, i32
  }
  func.func @transform_5(%arg0: i32) -> (i32, i32, i32) {
    %c0_i32 = arith.constant 0 : i32
    %c0_i32_0 = arith.constant 0 : i32
    %c0_i32_1 = arith.constant 0 : i32
    return %arg0, %c0_i32, %c0_i32_0 : i32, i32, i32
  }
}

</mosaic_0001>

<bundles_post_ra>
// kernel: tpu_custom_call.1
= control target key start
LH: loop header
LB: loop body
LE: loop exit
PB: predicated region body
PF: predicated region fallthrough
CT: control target
= control target key end

     0   :  { %10 = vsyncpa [#allocation3], 0  ;;  %s936_s0 = inlined_call_operand.vmem [shape: f32[2,4,256], index: 0, kind: input, shape index: {}]   ;;  %s937_s1 = inlined_call_operand.vmem [shape: f32[2,3,64], index: 1, kind: input, shape index: {}]   ;;  %s938_s2 = inlined_call_operand.hbm [shape: f32[64,256], index: 2, kind: input, shape index: {}]   ;;  %s939_s3 = inlined_call_operand.vmem [shape: f32[2,5,128], index: 3, kind: input, shape index: {}]   ;;  %s940_s4 = inlined_call_operand.hbm [shape: f32[128,256], index: 4, kind: input, shape index: {}]   ;;  %s941_s5 = inlined_call_operand.vmem [shape: f32[2,12,256], index: 5, kind: output, shape index: {}]  }
   0x1   :  { %11 = vsyncpa [#allocation5], 0  ;;  %s818_s18 = smov 0  }
   0x2 LB: > { %s824_s19 = sadd.s32 4294967295, %s781_s18   ;;  %p612_p0 = scmp.ge.s32.totalorder %s781_s18, 1  ;;  %s781_s18 = sphi %s818_s18, %s17_s18  }
   0x3   : > { %p168_p1 = scmp.lt.s32.totalorder %s781_s18, 3  ;;  %s783_s20 = smov [#allocation2]  }
   0x4   : > { %s180_s21 = sshll.u32 %s783_s20, 4  ;;  %p942_p3 = scmp.eq.s32.totalorder %s824_s19, 0  ;;  %s181_s21 = int_to_ptr.vmem [resolvable:$true] %s180_s21 }
   0x5   : > { %p828_p2 = pnand %p612_p0, %p168_p1  ;;  %s784_s23 = smov [#allocation4]  }
   0x6   : > { %s193_s24 = sshll.u32 %s784_s23, 4  ;;  %s711_s28 = scalar_lea.hbm %s938_s2, 2048  ;;  %s841_s24 = int_to_ptr.vmem [resolvable:$true] %s193_s24 }
   0x7   : > { %s944_s22 = scalar_select %p828_p2, 1, 0 }
   0x8   : > { %p686_p4 = pneg %p828_p2  ;;  %p712_p6 = scmp.ne.s32.totalorder %s938_s2, %s711_s28 }
   0x9   : > { %p718_p10 = scmp.lt.u32.totalorder %s711_s28, %s938_s2 }
   0xa   : > { %p837_p5 = pnand %p942_p3, %p686_p4 }
   0xc   : > { %p713_p7 = pneg %p837_p5 }
   0xe   : > { %p714_p8 = pnand %p713_p7, %p712_p6 }
  0x10   : > { %p715_p9 = pneg %p714_p8 }
  0x12   : > { %p720_p11 = pnand %p718_p10, %p715_p9 }
  0x14   : > { %723 = shalt.err (!%p720_p11)
}
  0x15   : > { %s724_s8 = scalar_lea.vmem %s181_s21, 2048  ;;  %p732_p1 = scmp.lt.s32.totalorder %s181_s21, %s181_s21 }
  0x16   : > { %p725_p12 = scmp.ne.s32.totalorder %s181_s21, %s724_s8  ;;  %p733_p4 = scmp.lt.s32.totalorder %s724_s8, %s724_s8 }
  0x18   : > { %p727_p13 = pnand %p725_p12, %p713_p7  ;;  %p734_p3 = por %p733_p4, %p732_p1 }
  0x1a   : > { %p728_p0 = pneg %p727_p13 }
  0x1c   : > { %p735_p2 = pnand %p734_p3, %p728_p0 }
  0x1e   : > { %738 = shalt.err (!%p735_p2)
}
  0x1f   : > { %s785_s9 = smov 256   ;;  %s786_s10 = smov 16  }
  0x20   : > { %689 = dma.hbm_to_vmem [thread:$0]  (!%p837_p5), %s938_s2, 2048, %s181_s21, [#allocation3], %s785_s9, %s785_s9, %s786_s10  }
  0x21   : > { %s739_s15 = scalar_lea.hbm %s940_s4, 4096 }
  0x22   : > { %p740_p6 = scmp.ne.s32.totalorder %s940_s4, %s739_s15  ;;  %p746_p8 = scmp.lt.u32.totalorder %s739_s15, %s940_s4 }
  0x24   : > { %p742_p2 = pnand %p740_p6, %p713_p7 }
  0x26   : > { %p743_p3 = pneg %p742_p2 }
  0x28   : > { %p748_p9 = pnand %p746_p8, %p743_p3 }
  0x2a   : > { %751 = shalt.err (!%p748_p9)
}
  0x2b   : > { %s752_s21 = scalar_lea.vmem %s841_s24, 4096  ;;  %p760_p13 = scmp.lt.s32.totalorder %s841_s24, %s841_s24 }
  0x2c   : > { %p753_p10 = scmp.ne.s32.totalorder %s841_s24, %s752_s21  ;;  %p761_p0 = scmp.lt.s32.totalorder %s752_s21, %s752_s21 }
  0x2e   : > { %p755_p11 = pnand %p753_p10, %p713_p7  ;;  %p762_p1 = por %p761_p0, %p760_p13 }
  0x30   : > { %p756_p12 = pneg %p755_p11 }
  0x32   : > { %p763_p4 = pnand %p762_p1, %p756_p12 }
  0x34   : > { %766 = shalt.err (!%p763_p4)
}
  0x35   : > { %692 = dma.hbm_to_vmem [thread:$0]  (!%p837_p5), %s940_s4, 4096, %s841_s24, [#allocation5], %s785_s9, %s785_s9, %s786_s10  }
  0x36   : > { %p946_p6 = scmp.ne.s32.totalorder %s944_s22, 0 }
  0x37   : > { %p947_p2 = scmp.eq.s32.totalorder (!%p946_p6), %s824_s19, 0 }
  0x38   : > { %231 = sbr.rel (%p946_p6) target bundleno = 318 (0x13e), region = 40 }
  0x3f   : > { %772 = dma.done.wait (%p947_p2), [#allocation3], 2048   ;;  %p948_p7 = pmov %p947_p2 }
  0x40   : > { %p949_p3 = pmov %p947_p2 }
  0x41   : > { %774 = vsyncadd (%p948_p7), [#allocation3], 4294965248 }
  0x42   : > { %776 = dma.done.wait (%p949_p3), [#allocation5], 4096   ;;  %p950_p8 = pmov %p947_p2 }
  0x43   : > { %v787_v0 = vmov 0.0   ;;  %v397_v1 = vld [vmem:[#allocation4 + $0x8] sm:$0xff]  ;;  %v399_v2 = vld [vmem:[#allocation4 + $0x18] sm:$0xff]  ;;  %v396_v3 = vld [vmem:[#allocation4] sm:$0xff]  ;;  %p271_p5 = scmp.lt.s32.totalorder %s824_s19, 1  ;;  %vm312_vm0 = vcmask 523264  }
  0x44   : > { %778 = vsyncadd (%p950_p8), [#allocation5], 4294963200  ;;  %380 = vmatprep.mubr.f32.mxu0 %v787_v0  ;;  %492 = vmatprep.mubr.f32.mxu1 %v787_v0  ;;  %v646_v4 = vpack.c.bf16 %v399_v2, %v397_v1  ;;  %v398_v5 = vld [vmem:[#allocation4 + $0x10] sm:$0xff]  ;;  %v401_v6 = vld [vmem:[#allocation4 + $0x28] sm:$0xff] }
  0x45   : > { %v403_v7 = vld [vmem:[#allocation4 + $0x38] sm:$0xff]  ;;  %v648_v8 = vpack.c.bf16 %v398_v5, %v396_v3  ;;  %v400_v10 = vld [vmem:[#allocation4 + $0x20] sm:$0xff]  ;;  %v402_v11 = vld [vmem:[#allocation4 + $0x30] sm:$0xff]  ;;  %s952_s19 = smov (!%p271_p5, %s824_s19), 1 }
  0x46   : > { %v650_v9 = vpack.c.bf16 %v403_v7, %v401_v6  ;;  %v405_v12 = vld [vmem:[#allocation4 + $0x48] sm:$0xff]  ;;  %647 = vmatprep.subr.bf16.mxu1 %v646_v4  ;;  %v407_v13 = vld [vmem:[#allocation4 + $0x58] sm:$0xff]  ;;  %v652_v14 = vpack.c.bf16 %v402_v11, %v400_v10  ;;  %v404_v15 = vld [vmem:[#allocation4 + $0x40] sm:$0xff]  ;;  %s629_s22 = sshll.u32 %s952_s19, 5  ;;  %s628_s24 = sshll.u32 %s952_s19, 3 }
  0x47   : > { %649 = vmatpush1.bf16.msra.mxu1 %v648_v8  ;;  %v406_v16 = vld [vmem:[#allocation4 + $0x50] sm:$0xff]  ;;  %v654_v17 = vpack.c.bf16 %v407_v13, %v405_v12  ;;  %v409_v18 = vld [vmem:[#allocation4 + $0x68] sm:$0xff]  ;;  %v299_v20 = vld [vmem:[#allocation2 + $0x18] sm:$0xff]  ;;  %s275_s29 = scalar_lea.vmem %s936_s0, %s628_s24  ;;  %s916_s7 = scalar_lea.vmem %s941_s5, %s629_s22 }
  0x48   : > { %651 = vmatprep.subr.bf16.mxu1 %v650_v9  ;;  %v297_v19 = vld [vmem:[#allocation2 + $0x8] sm:$0xff]  ;;  %v411_v21 = vld [vmem:[#allocation4 + $0x78] sm:$0xff]  ;;  %v296_v23 = vld [vmem:[#allocation2] sm:$0xff]  ;;  %v656_v26 = vpack.c.bf16 %v406_v16, %v404_v15  ;;  %s621_s8 = sshll.u32 %s952_s19, 2  ;;  %s283_s14 = scalar_lea.vmem %s939_s3, %s628_s24 }
  0x49   : > { %v630_v22 = vpack.c.bf16 %v299_v20, %v297_v19  ;;  %v298_v24 = vld [vmem:[#allocation2 + $0x10] sm:$0xff]  ;;  %v301_v27 = vld [vmem:[#allocation2 + $0x28] sm:$0xff]  ;;  %v303_v28 = vld [vmem:[#allocation2 + $0x38] sm:$0xff]  ;;  %v658_v30 = vpack.c.bf16 %v411_v21, %v409_v18  ;;  %s279_s11 = scalar_lea.vmem %s937_s1, %s621_s8 }
  0x4a   : > { %v632_v25 = vpack.c.bf16 %v298_v24, %v296_v23  ;;  %v300_v29 = vld [vmem:[#allocation2 + $0x20] sm:$0xff]  ;;  %v410_v32 = vld [vmem:[#allocation4 + $0x70] sm:$0xff]  ;;  %v634_v33 = vpack.c.bf16 %v303_v28, %v301_v27  ;;  %v413_v35 = vld [vmem:[#allocation4 + $0x88] sm:$0xff] }
  0x4b   : > { %653 = vmatpush1.bf16.msra.mxu1 %v652_v14  ;;  %631 = vmatprep.subr.bf16.mxu0 %v630_v22  ;;  %v408_v31 = vld [vmem:[#allocation4 + $0x60] sm:$0xff]  ;;  %v302_v34 = vld [vmem:[#allocation2 + $0x30] sm:$0xff]  ;;  %v415_v36 = vld [vmem:[#allocation4 + $0x98] sm:$0xff] }
  0x4c   : > { %655 = vmatprep.subr.bf16.mxu1 %v654_v17  ;;  %633 = vmatpush1.bf16.msra.mxu0 %v632_v25  ;;  %v636_v37 = vpack.c.bf16 %v302_v34, %v300_v29  ;;  %v305_v38 = vld [vmem:[#allocation2 + $0x48] sm:$0xff]  ;;  %v307_v39 = vld [vmem:[#allocation2 + $0x58] sm:$0xff]  ;;  %v304_v40 = vld [vmem:[#allocation2 + $0x40] sm:$0xff]  ;;  %v660_v42 = vpack.c.bf16 %v410_v32, %v408_v31  ;;  %v662_v46 = vpack.c.bf16 %v415_v36, %v413_v35 }
  0x4d   : > { %635 = vmatprep.subr.bf16.mxu0 %v634_v33  ;;  %v306_v41 = vld [vmem:[#allocation2 + $0x50] sm:$0xff]  ;;  %v412_v43 = vld [vmem:[#allocation4 + $0x80] sm:$0xff]  ;;  %v638_v45 = vpack.c.bf16 %v307_v39, %v305_v38  ;;  %v417_v47 = vld [vmem:[#allocation4 + $0xa8] sm:$0xff] }
  0x4e   : > { %v414_v44 = vld [vmem:[#allocation4 + $0x90] sm:$0xff]  ;;  %v640_v48 = vpack.c.bf16 %v306_v41, %v304_v40  ;;  %v309_v49 = vld [vmem:[#allocation2 + $0x68] sm:$0xff]  ;;  %v311_v50 = vld [vmem:[#allocation2 + $0x78] sm:$0xff] }
  0x4f   : > { %657 = vmatpush1.bf16.msra.mxu1 %v656_v26  ;;  %v419_v51 = vld [vmem:[#allocation4 + $0xb8] sm:$0xff]  ;;  %v642_v52 = vpack.c.bf16 %v311_v50, %v309_v49  ;;  %v308_v53 = vld [vmem:[#allocation2 + $0x60] sm:$0xff]  ;;  %v310_v54 = vld [vmem:[#allocation2 + $0x70] sm:$0xff]  ;;  %v664_v55 = vpack.c.bf16 %v414_v44, %v412_v43 }
  0x50   : > { %659 = vmatprep.subr.bf16.mxu1 %v658_v30  ;;  %637 = vmatpush1.bf16.msra.mxu0 %v636_v37  ;;  %v289_v56 = vld [vmem:[%s275_s29] sm:$0xff]  ;;  %v666_v57 = vpack.c.bf16 %v419_v51, %v417_v47  ;;  %v418_v59 = vld [vmem:[#allocation4 + $0xb0] sm:$0xff]  ;;  %v644_v60 = vpack.c.bf16 %v310_v54, %v308_v53  ;;  %v421_v62 = vld [vmem:[#allocation4 + $0xc8] sm:$0xff] }
  0x51   : > { %639 = vmatprep.subr.bf16.mxu0 %v638_v45  ;;  %v416_v58 = vld [vmem:[#allocation4 + $0xa0] sm:$0xff]  ;;  %v291_v61 = vcombine.high %v289_v56, %v289_v56  ;;  %293 = vst [vmem:[%s916_s7] sm:$0xf] %v289_v56  ;;  %v423_v63 = vld [vmem:[#allocation4 + $0xd8] sm:$0xff]  ;;  %v422_v3 = vld [vmem:[#allocation4 + $0xd0] sm:$0xff] }
  0x52   : > { %v668_v0 = vpack.c.bf16 %v418_v59, %v416_v58  ;;  %v670_v1 = vpack.c.bf16 %v423_v63, %v421_v62  ;;  %v420_v2 = vld [vmem:[#allocation4 + $0xc0] sm:$0xff]  ;;  %v425_v5 = vld [vmem:[#allocation4 + $0xe8] sm:$0xff]  ;;  %v427_v6 = vld [vmem:[#allocation4 + $0xf8] sm:$0xff] }
  0x53   : > { %661 = vmatpush1.bf16.msra.mxu1 %v660_v42  ;;  %294 = vst [vmem:[%s916_s7 + $0x8] sm:$0xf] %v291_v61  ;;  %v295_v4 = vld [vmem:[%s279_s11] sm:$0x7]  ;;  %v672_v7 = vpack.c.bf16 %v422_v3, %v420_v2  ;;  %v674_v8 = vpack.c.bf16 %v427_v6, %v425_v5  ;;  %v426_v10 = vld [vmem:[#allocation4 + $0xf0] sm:$0xff] }
  0x54   : > { %663 = vmatprep.subr.bf16.mxu1 %v662_v46  ;;  %641 = vmatpush1.bf16.msra.mxu0 %v640_v48  ;;  %v424_v9 = vld [vmem:[#allocation4 + $0xe0] sm:$0xff] }
  0x55   : > { %643 = vmatprep.subr.bf16.mxu0 %v642_v52  ;;  %v676_v11 = vpack.c.bf16 %v426_v10, %v424_v9  ;;  %v395_v12 = vld [vmem:[%s283_s14] sm:$0x1f] }
  0x57   : > { %665 = vmatpush1.bf16.msra.mxu1 %v664_v55 }
  0x58   : > { %667 = vmatprep.subr.bf16.mxu1 %v666_v57  ;;  %645 = vmatpush1.bf16.msra.mxu0 %v644_v60 }
  0x5b   : > { %669 = vmatpush1.bf16.msra.mxu1 %v668_v0  ;;  %625 = vmatmul.mubr.msk.f32.vlgmr.msra.gmra.mrb[0].mxu0 %vm312_vm0, %v295_v4 }
  0x5c   : > { %671 = vmatprep.subr.bf16.mxu1 %v670_v1 }
  0x5f   : > { %673 = vmatpush1.bf16.msra.mxu1 %v672_v7 }
  0x60   : > { %675 = vmatprep.subr.bf16.mxu1 %v674_v8 }
  0x63   : > { %677 = vmatpush1.bf16.msra.mxu1 %v676_v11 }
  0x66   : > { %493 = vmatmul.mubr.f32.vlgmr.msra.gmra.mrb[0].mxu1 %v395_v12 }
 0x12e   : > { %v382_v13 = vpop.f32.mrb[0].mxu0 }
 0x12f   : > { %v389_v14 = vrot.slane %v382_v13, 4  ;;  %v384_v15 = vpop.f32.mrb[1].mxu0 }
 0x130   : > { %v390_v16 = vrot.slane %v384_v15, 4 }
 0x131   : > { %393 = vst [vmem:[%s916_s7] sm:$0x70] %v389_v14 }
 0x132   : > { %394 = vst [vmem:[%s916_s7 + $0x8] sm:$0x70] %v390_v16 }
 0x139   : > { %v494_v17 = vpop.f32.mrb[0].mxu1 }
 0x13a   : > { %v501_v18 = vrot.slane %v494_v17, 1  ;;  %v496_v19 = vpop.f32.mrb[1].mxu1 }
 0x13b   : > { %v502_v20 = vrot.slane %v496_v19, 1 }
 0x13c   : > { %505 = vst [vmem:[%s916_s7 + $0x10] ss:$-12 sps:$4 sm:$0x8f] %v501_v18  }
 0x13d   : > { %506 = vst [vmem:[%s916_s7 + $0x18] ss:$-12 sps:$4 sm:$0x8f] %v502_v20  }
 0x13e PF: > { %s17_s18 = sadd.s32 1, %s781_s18  }
 0x13f   : > { %p14_p9 = scmp.ge.s32.totalorder %s17_s18, 4  }
 0x141   :  { %16 = sbr.rel (!%p14_p9) target bundleno = 2 (0x2), region = 85 }
 0x148   :  { %530 = vsyncpa [#allocation3], 1 }
 0x149   :  { %532 = vsyncpa [#allocation3 + $0x1], 1 }
 0x14a   :  { %533 = vsyncpa [#allocation5], 1 }

</bundles_post_ra>
